<compile_context>
chip_gen: v6e
topology: v6e:2x2x1
jax: 0.10.0
libtpu: 0.0.40
codegen_flags: <defaults>
</compile_context>

<pallas_src>
import functools

import numpy as np
import jax
import jax.numpy as jnp
from jax.experimental import pallas as pl
from jax.experimental.pallas import tpu as pltpu

EPS = 1e-5


# ------------------------- fused pool + conv + BN + ReLU kernel -------------------------
def _fused_attention_kernel(xps_ref, r_ref, wb_ref, sred_ref, gb_ref, o_ref, *,
                            kh, wo, inv_m):
    # xps_ref : (P, N*Hp, Wp*Cin)  pooling-phase-split input rows
    # r_ref   : (KH, N*Ho, N*Hp)   0/1 row-selection (output row (n,i) <- pooled row (n,i+ky))
    # wb_ref  : (KH, Wp*Cin, Wo*Cout) banded folded conv weights (W-taps + channel mix)
    # sred_ref: (Wo*Cout, Cout)    0/1 lane-group -> channel reducer
    # gb_ref  : (2, Cout)          [gamma; beta]
    # o_ref   : (N*Ho, Wo*Cout)    NHWC output, (W, Cout) flattened on lanes
    f32 = jnp.float32

    # 1) MaxPool2d == max over the P = ph*pw pooling phases (leading axis).
    pooled = jnp.max(xps_ref[...], axis=0)                              # (N*Hp, Wp*Cin)

    # 2) depthwise(grouped) conv folded with the 1x1 conv: KH banded matmuls.
    q = jnp.zeros(o_ref.shape, f32)
    for ky in range(kh):                                                # static unroll
        t = jnp.dot(pooled, wb_ref[ky], preferred_element_type=f32)     # (N*Hp, Wo*Cout)
        q = q + jnp.dot(r_ref[ky], t, preferred_element_type=f32)       # (N*Ho, Wo*Cout)

    # 3) training-mode BatchNorm (batch stats over N, Ho, Wo per channel) + ReLU.
    mean_c = jnp.sum(jnp.dot(q, sred_ref[...], preferred_element_type=f32),
                     axis=0, keepdims=True) * inv_m                     # (1, Cout)
    qc = q - jnp.tile(mean_c, (1, wo))                                  # centered
    var_c = jnp.sum(jnp.dot(qc * qc, sred_ref[...], preferred_element_type=f32),
                    axis=0, keepdims=True) * inv_m                      # biased var (1, Cout)
    scale_c = gb_ref[0:1, :] * jax.lax.rsqrt(var_c + EPS)               # gamma * inv_std
    y = qc * jnp.tile(scale_c, (1, wo)) + jnp.tile(gb_ref[1:2, :], (1, wo))
    o_ref[...] = jnp.maximum(y, 0.0)


def attention_forward(x, params, kernel_size=(3, 3), pooling_size=(2, 2)):
    """x: (N, C_in, H, W) float32 (PyTorch NCHW) -> (N, C_out, H_out, W_out)."""
    wd, wp, gamma, beta = (params[k] for k in ("wd", "wp", "gamma", "beta"))
    # NOTE: bd / bp are read by the reference but cancel exactly under
    # training-mode BatchNorm, so the kernel path drops them.
    f32 = jnp.float32
    N, Cin, H, W = x.shape
    Cout = wd.shape[0]
    KH, KW = kernel_size
    ph, pw = pooling_size
    Hp, Wp = H // ph, W // pw
    Ho, Wo = Hp - KH + 1, Wp - KW + 1
    P = ph * pw
    M = N * Ho * Wo
    opg = Cout // Cin

    # ---- host glue: one cheap layout pass over the tiny input (pool-phase split) ----
    x_nhwc = jnp.transpose(x[:, :, :Hp * ph, :Wp * pw], (0, 2, 3, 1)).astype(f32)
    xps = x_nhwc.reshape(N, Hp, ph, Wp, pw, Cin)
    xps = jnp.transpose(xps, (2, 4, 0, 1, 3, 5)).reshape(P, N * Hp, Wp * Cin)

    # ---- trace-time weight folding: depthwise(grouped) conv ∘ pointwise conv ----
    # W_comb[o, ky, kx, c] = sum_{d in group c} wp[o, d] * wd[d, 0, ky, kx]
    onehot_dc = jnp.asarray(
        (np.arange(Cout) // opg)[:, None] == np.arange(Cin)[None, :], f32)     # (d, c)
    w_comb = jnp.einsum('od,dyk,dc->oykc',
                        wp[:, :, 0, 0].astype(f32), wd[:, 0].astype(f32), onehot_dc)

    # re-band so the W-direction taps + channel mixing become one matmul per ky:
    # wb[ky, jx*Cin + c, j*Cout + o] = W_comb[o, ky, jx - j, c] (0 elsewhere)
    band = np.zeros((KW, Wo, Wp), np.float32)
    for kx in range(KW):
        band[kx, np.arange(Wo), np.arange(Wo) + kx] = 1.0
    wb = jnp.einsum('kjx,oykc->yxcjo', jnp.asarray(band), w_comb)
    wb = wb.reshape(KH, Wp * Cin, Wo * Cout)

    # row-selection matrices: output row (n, i) reads pooled row (n, i + ky).
    rsel = np.zeros((KH, N * Ho, N * Hp), np.float32)
    for ky in range(KH):
        for n in range(N):
            rsel[ky, n * Ho + np.arange(Ho), n * Hp + np.arange(Ho) + ky] = 1.0
    rsel = jnp.asarray(rsel)

    # per-channel lane-group reducer: sred[j*Cout + o, o] = 1.
    sred = np.zeros((Wo * Cout, Cout), np.float32)
    sred[np.arange(Wo * Cout), np.arange(Wo * Cout) % Cout] = 1.0
    sred = jnp.asarray(sred)

    gb = jnp.stack([gamma, beta]).astype(f32)                                   # (2, Cout)

    # ---- single fused Pallas kernel: pool -> conv -> BN -> ReLU, VMEM-resident ----
    out2d = pl.pallas_call(
        functools.partial(_fused_attention_kernel, kh=KH, wo=Wo, inv_m=1.0 / M),
        out_shape=jax.ShapeDtypeStruct((N * Ho, Wo * Cout), f32),
        grid=(1,),
        in_specs=[
            pl.BlockSpec((P, N * Hp, Wp * Cin), lambda i: (0, 0, 0)),
            pl.BlockSpec((KH, N * Ho, N * Hp), lambda i: (0, 0, 0)),
            pl.BlockSpec((KH, Wp * Cin, Wo * Cout), lambda i: (0, 0, 0)),
            pl.BlockSpec((Wo * Cout, Cout), lambda i: (0, 0)),
            pl.BlockSpec((2, Cout), lambda i: (0, 0)),
        ],
        out_specs=pl.BlockSpec((N * Ho, Wo * Cout), lambda i: (0, 0)),
        compiler_params=pltpu.CompilerParams(dimension_semantics=("arbitrary",)),
    )(xps, rsel, wb, sred, gb)

    # ---- host glue: back to NCHW (tiny; could be skipped if consumer takes NHWC) ----
    out = out2d.reshape(N, Ho, Wo, Cout)
    return jnp.transpose(out, (0, 3, 1, 2))


def reference_forward(x, params, kernel_size=(3, 3), pooling_size=(2, 2)):
    """Independent pure-JAX reference (reduce_window + conv_general_dilated)."""
    wd, bd, wp, bp, gamma, beta = (params[k] for k in
                                   ("wd", "bd", "wp", "bp", "gamma", "beta"))
    Cin = x.shape[1]
    xp = jax.lax.reduce_window(x, -jnp.inf, jax.lax.max,
                               (1, 1) + pooling_size, (1, 1) + pooling_size, 'VALID')
    d = jax.lax.conv_general_dilated(
        xp, wd, (1, 1), 'VALID',
        dimension_numbers=('NCHW', 'OIHW', 'NCHW'),
        feature_group_count=Cin) + bd[None, :, None, None]
    p = jax.lax.conv_general_dilated(
        d, wp, (1, 1), 'VALID',
        dimension_numbers=('NCHW', 'OIHW', 'NCHW')) + bp[None, :, None, None]
    mean = jnp.mean(p, axis=(0, 2, 3), keepdims=True)
    var = jnp.mean(jnp.square(p - mean), axis=(0, 2, 3), keepdims=True)
    y = (p - mean) * jax.lax.rsqrt(var + EPS) * gamma[None, :, None, None] \
        + beta[None, :, None, None]
    return jnp.maximum(y, 0.0)


if __name__ == "__main__":
    N, Cin, H, W = 2, 4, 16, 16
    Cout = 8
    kernel_size = (3, 3)
    pooling_size = (2, 2)

    key = jax.random.PRNGKey(0)
    ks = jax.random.split(key, 7)
    x = jax.random.normal(ks[0], (N, Cin, H, W), jnp.float32)
    params = dict(
        wd=0.2 * jax.random.normal(ks[1], (Cout, 1, *kernel_size), jnp.float32),
        bd=0.1 * jax.random.normal(ks[2], (Cout,), jnp.float32),
        wp=0.2 * jax.random.normal(ks[3], (Cout, Cout, 1, 1), jnp.float32),
        bp=0.1 * jax.random.normal(ks[4], (Cout,), jnp.float32),
        gamma=1.0 + 0.1 * jax.random.normal(ks[5], (Cout,), jnp.float32),
        beta=0.1 * jax.random.normal(ks[6], (Cout,), jnp.float32),
    )

    fwd = jax.jit(functools.partial(attention_forward,
                                    kernel_size=kernel_size,
                                    pooling_size=pooling_size))
    out = jax.block_until_ready(fwd(x, params))
    ref = jax.block_until_ready(reference_forward(x, params, kernel_size, pooling_size))

    assert out.shape == (N, Cout, H // 2 - 2, W // 2 - 2), out.shape
    err = float(jnp.max(jnp.abs(out - ref)))
    if not bool(jnp.allclose(out, ref, atol=1e-4, rtol=1e-4)):
        raise AssertionError(f"Pallas kernel mismatch vs reference, max abs err = {err}")
    print("KERNEL_OK")
</pallas_src>

<mosaic_0001>
module attributes {stable_mosaic.version = 11 : i64} {
  func.func @_fused_attention_kernel(%arg0: i32, %arg1: memref<4x16x32xf32, #tpu.memory_space<vmem>>, %arg2: memref<3x12x16xf32, #tpu.memory_space<vmem>>, %arg3: memref<3x32x48xf32, #tpu.memory_space<vmem>>, %arg4: memref<48x8xf32, #tpu.memory_space<vmem>>, %arg5: memref<2x8xf32, #tpu.memory_space<vmem>>, %arg6: memref<12x48xf32, #tpu.memory_space<vmem>>) attributes {dimension_semantics = [#tpu.dimension_semantics<arbitrary>], iteration_bounds = array<i64: 1>, scalar_prefetch = 0 : i64, scratch_operands = 0 : i64, tpu.core_type = #tpu.core_type<tc>, window_params = [{pipeline_mode = #tpu.pipeline_mode<synchronous>, transform_indices = @transform_0, window_bounds = array<i64: 4, 16, 32>}, {pipeline_mode = #tpu.pipeline_mode<synchronous>, transform_indices = @transform_1, window_bounds = array<i64: 3, 12, 16>}, {pipeline_mode = #tpu.pipeline_mode<synchronous>, transform_indices = @transform_2, window_bounds = array<i64: 3, 32, 48>}, {pipeline_mode = #tpu.pipeline_mode<synchronous>, transform_indices = @transform_3, window_bounds = array<i64: 48, 8>}, {pipeline_mode = #tpu.pipeline_mode<synchronous>, transform_indices = @transform_4, window_bounds = array<i64: 2, 8>}, {pipeline_mode = #tpu.pipeline_mode<synchronous>, transform_indices = @transform_5, window_bounds = array<i64: 12, 48>}]} {
    %c0 = arith.constant 0 : index
    %c0_0 = arith.constant 0 : index
    %c0_1 = arith.constant 0 : index
    %0 = vector.load %arg1[%c0, %c0_0, %c0_1] : memref<4x16x32xf32, #tpu.memory_space<vmem>>, vector<4x16x32xf32>
    %cst = arith.constant dense<0xFF800000> : vector<16x32xf32>
    %1 = vector.multi_reduction <maximumf>, %0, %cst [0] : vector<4x16x32xf32> to vector<16x32xf32>
    %cst_2 = arith.constant 0.000000e+00 : f32
    %2 = vector.broadcast %cst_2 : f32 to vector<12x48xf32>
    %c0_3 = arith.constant 0 : index
    %c0_4 = arith.constant 0 : index
    %c0_5 = arith.constant 0 : index
    %3 = vector.load %arg3[%c0_3, %c0_4, %c0_5] : memref<3x32x48xf32, #tpu.memory_space<vmem>>, vector<1x32x48xf32>
    %4 = vector.shape_cast %3 : vector<1x32x48xf32> to vector<32x48xf32>
    %cst_6 = arith.constant dense<0.000000e+00> : vector<16x48xf32>
    %5 = tpu.matmul %1, %4, %cst_6 {dimension_numbers = #tpu.dot_dimension_numbers<[1], [0], [0], [1], [0, 0, 1, 1], [], []>} : vector<16x32xf32>, vector<32x48xf32>, vector<16x48xf32> -> vector<16x48xf32>
    %c0_7 = arith.constant 0 : index
    %c0_8 = arith.constant 0 : index
    %c0_9 = arith.constant 0 : index
    %6 = vector.load %arg2[%c0_7, %c0_8, %c0_9] : memref<3x12x16xf32, #tpu.memory_space<vmem>>, vector<1x12x16xf32>
    %7 = vector.shape_cast %6 : vector<1x12x16xf32> to vector<12x16xf32>
    %cst_10 = arith.constant dense<0.000000e+00> : vector<12x48xf32>
    %8 = tpu.matmul %7, %5, %cst_10 {dimension_numbers = #tpu.dot_dimension_numbers<[1], [0], [0], [1], [0, 0, 1, 1], [], []>} : vector<12x16xf32>, vector<16x48xf32>, vector<12x48xf32> -> vector<12x48xf32>
    %9 = arith.addf %2, %8 : vector<12x48xf32>
    %c1 = arith.constant 1 : index
    %c0_11 = arith.constant 0 : index
    %c0_12 = arith.constant 0 : index
    %10 = vector.load %arg3[%c1, %c0_11, %c0_12] : memref<3x32x48xf32, #tpu.memory_space<vmem>>, vector<1x32x48xf32>
    %11 = vector.shape_cast %10 : vector<1x32x48xf32> to vector<32x48xf32>
    %cst_13 = arith.constant dense<0.000000e+00> : vector<16x48xf32>
    %12 = tpu.matmul %1, %11, %cst_13 {dimension_numbers = #tpu.dot_dimension_numbers<[1], [0], [0], [1], [0, 0, 1, 1], [], []>} : vector<16x32xf32>, vector<32x48xf32>, vector<16x48xf32> -> vector<16x48xf32>
    %c1_14 = arith.constant 1 : index
    %c0_15 = arith.constant 0 : index
    %c0_16 = arith.constant 0 : index
    %13 = vector.load %arg2[%c1_14, %c0_15, %c0_16] : memref<3x12x16xf32, #tpu.memory_space<vmem>>, vector<1x12x16xf32>
    %14 = vector.shape_cast %13 : vector<1x12x16xf32> to vector<12x16xf32>
    %cst_17 = arith.constant dense<0.000000e+00> : vector<12x48xf32>
    %15 = tpu.matmul %14, %12, %cst_17 {dimension_numbers = #tpu.dot_dimension_numbers<[1], [0], [0], [1], [0, 0, 1, 1], [], []>} : vector<12x16xf32>, vector<16x48xf32>, vector<12x48xf32> -> vector<12x48xf32>
    %16 = arith.addf %9, %15 : vector<12x48xf32>
    %c2 = arith.constant 2 : index
    %c0_18 = arith.constant 0 : index
    %c0_19 = arith.constant 0 : index
    %17 = vector.load %arg3[%c2, %c0_18, %c0_19] : memref<3x32x48xf32, #tpu.memory_space<vmem>>, vector<1x32x48xf32>
    %18 = vector.shape_cast %17 : vector<1x32x48xf32> to vector<32x48xf32>
    %cst_20 = arith.constant dense<0.000000e+00> : vector<16x48xf32>
    %19 = tpu.matmul %1, %18, %cst_20 {dimension_numbers = #tpu.dot_dimension_numbers<[1], [0], [0], [1], [0, 0, 1, 1], [], []>} : vector<16x32xf32>, vector<32x48xf32>, vector<16x48xf32> -> vector<16x48xf32>
    %c2_21 = arith.constant 2 : index
    %c0_22 = arith.constant 0 : index
    %c0_23 = arith.constant 0 : index
    %20 = vector.load %arg2[%c2_21, %c0_22, %c0_23] : memref<3x12x16xf32, #tpu.memory_space<vmem>>, vector<1x12x16xf32>
    %21 = vector.shape_cast %20 : vector<1x12x16xf32> to vector<12x16xf32>
    %cst_24 = arith.constant dense<0.000000e+00> : vector<12x48xf32>
    %22 = tpu.matmul %21, %19, %cst_24 {dimension_numbers = #tpu.dot_dimension_numbers<[1], [0], [0], [1], [0, 0, 1, 1], [], []>} : vector<12x16xf32>, vector<16x48xf32>, vector<12x48xf32> -> vector<12x48xf32>
    %23 = arith.addf %16, %22 : vector<12x48xf32>
    %c0_25 = arith.constant 0 : index
    %c0_26 = arith.constant 0 : index
    %24 = vector.load %arg4[%c0_25, %c0_26] : memref<48x8xf32, #tpu.memory_space<vmem>>, vector<48x8xf32>
    %cst_27 = arith.constant dense<0.000000e+00> : vector<12x8xf32>
    %25 = tpu.matmul %23, %24, %cst_27 {dimension_numbers = #tpu.dot_dimension_numbers<[1], [0], [0], [1], [0, 0, 1, 1], [], []>} : vector<12x48xf32>, vector<48x8xf32>, vector<12x8xf32> -> vector<12x8xf32>
    %cst_28 = arith.constant dense<0.000000e+00> : vector<8xf32>
    %26 = vector.multi_reduction <add>, %25, %cst_28 [0] : vector<12x8xf32> to vector<8xf32>
    %27 = vector.shape_cast %26 : vector<8xf32> to vector<1x8xf32>
    %cst_29 = arith.constant 0.013888889 : f32
    %28 = vector.broadcast %cst_29 : f32 to vector<1x8xf32>
    %29 = arith.mulf %27, %28 : vector<1x8xf32>
    %30 = tpu.concatenate %29, %29, %29, %29, %29, %29 in 1 : vector<1x8xf32>, vector<1x8xf32>, vector<1x8xf32>, vector<1x8xf32>, vector<1x8xf32>, vector<1x8xf32> -> vector<1x48xf32>
    %31 = vector.broadcast %30 : vector<1x48xf32> to vector<12x48xf32>
    %32 = arith.subf %23, %31 : vector<12x48xf32>
    %33 = arith.mulf %32, %32 : vector<12x48xf32>
    %c0_30 = arith.constant 0 : index
    %c0_31 = arith.constant 0 : index
    %34 = vector.load %arg4[%c0_30, %c0_31] : memref<48x8xf32, #tpu.memory_space<vmem>>, vector<48x8xf32>
    %cst_32 = arith.constant dense<0.000000e+00> : vector<12x8xf32>
    %35 = tpu.matmul %33, %34, %cst_32 {dimension_numbers = #tpu.dot_dimension_numbers<[1], [0], [0], [1], [0, 0, 1, 1], [], []>} : vector<12x48xf32>, vector<48x8xf32>, vector<12x8xf32> -> vector<12x8xf32>
    %cst_33 = arith.constant dense<0.000000e+00> : vector<8xf32>
    %36 = vector.multi_reduction <add>, %35, %cst_33 [0] : vector<12x8xf32> to vector<8xf32>
    %37 = vector.shape_cast %36 : vector<8xf32> to vector<1x8xf32>
    %cst_34 = arith.constant 0.013888889 : f32
    %38 = vector.broadcast %cst_34 : f32 to vector<1x8xf32>
    %39 = arith.mulf %37, %38 : vector<1x8xf32>
    %c0_35 = arith.constant 0 : index
    %c0_36 = arith.constant 0 : index
    %40 = vector.load %arg5[%c0_35, %c0_36] : memref<2x8xf32, #tpu.memory_space<vmem>>, vector<1x8xf32>
    %cst_37 = arith.constant 9.99999974E-6 : f32
    %41 = vector.broadcast %cst_37 : f32 to vector<1x8xf32>
    %42 = arith.addf %39, %41 : vector<1x8xf32>
    %43 = math.rsqrt %42 : vector<1x8xf32>
    %44 = arith.mulf %40, %43 : vector<1x8xf32>
    %45 = tpu.concatenate %44, %44, %44, %44, %44, %44 in 1 : vector<1x8xf32>, vector<1x8xf32>, vector<1x8xf32>, vector<1x8xf32>, vector<1x8xf32>, vector<1x8xf32> -> vector<1x48xf32>
    %46 = vector.broadcast %45 : vector<1x48xf32> to vector<12x48xf32>
    %47 = arith.mulf %32, %46 : vector<12x48xf32>
    %c1_38 = arith.constant 1 : index
    %c0_39 = arith.constant 0 : index
    %48 = vector.load %arg5[%c1_38, %c0_39] : memref<2x8xf32, #tpu.memory_space<vmem>>, vector<1x8xf32>
    %49 = tpu.concatenate %48, %48, %48, %48, %48, %48 in 1 : vector<1x8xf32>, vector<1x8xf32>, vector<1x8xf32>, vector<1x8xf32>, vector<1x8xf32>, vector<1x8xf32> -> vector<1x48xf32>
    %50 = vector.broadcast %49 : vector<1x48xf32> to vector<12x48xf32>
    %51 = arith.addf %47, %50 : vector<12x48xf32>
    %cst_40 = arith.constant 0.000000e+00 : f32
    %52 = vector.broadcast %cst_40 : f32 to vector<12x48xf32>
    %53 = arith.maximumf %51, %52 : vector<12x48xf32>
    %c0_41 = arith.constant 0 : index
    %c0_42 = arith.constant 0 : index
    %54 = vector.load %arg6[%c0_41, %c0_42] : memref<12x48xf32, #tpu.memory_space<vmem>>, vector<12x48xf32>
    tpu.vector_store %arg6[%c0_41, %c0_42], %53 {strides = array<i32>} : memref<12x48xf32, #tpu.memory_space<vmem>>, vector<12x48xf32>,
    return
  }
  func.func @transform_0(%arg0: i32) -> (i32, i32, i32) {
    %c0_i32 = arith.constant 0 : i32
    %c0_i32_0 = arith.constant 0 : i32
    %c0_i32_1 = arith.constant 0 : i32
    %c0_i32_2 = arith.constant 0 : i32
    return %c0_i32, %c0_i32_0, %c0_i32_1 : i32, i32, i32
  }
  func.func @transform_1(%arg0: i32) -> (i32, i32, i32) {
    %c0_i32 = arith.constant 0 : i32
    %c0_i32_0 = arith.constant 0 : i32
    %c0_i32_1 = arith.constant 0 : i32
    %c0_i32_2 = arith.constant 0 : i32
    return %c0_i32, %c0_i32_0, %c0_i32_1 : i32, i32, i32
  }
  func.func @transform_2(%arg0: i32) -> (i32, i32, i32) {
    %c0_i32 = arith.constant 0 : i32
    %c0_i32_0 = arith.constant 0 : i32
    %c0_i32_1 = arith.constant 0 : i32
    %c0_i32_2 = arith.constant 0 : i32
    return %c0_i32, %c0_i32_0, %c0_i32_1 : i32, i32, i32
  }
  func.func @transform_3(%arg0: i32) -> (i32, i32) {
    %c0_i32 = arith.constant 0 : i32
    %c0_i32_0 = arith.constant 0 : i32
    %c0_i32_1 = arith.constant 0 : i32
    return %c0_i32, %c0_i32_0 : i32, i32
  }
  func.func @transform_4(%arg0: i32) -> (i32, i32) {
    %c0_i32 = arith.constant 0 : i32
    %c0_i32_0 = arith.constant 0 : i32
    %c0_i32_1 = arith.constant 0 : i32
    return %c0_i32, %c0_i32_0 : i32, i32
  }
  func.func @transform_5(%arg0: i32) -> (i32, i32) {
    %c0_i32 = arith.constant 0 : i32
    %c0_i32_0 = arith.constant 0 : i32
    %c0_i32_1 = arith.constant 0 : i32
    return %c0_i32, %c0_i32_0 : i32, i32
  }
}

</mosaic_0001>

<bundles_post_ra>
// kernel: attention_forward.1
= control target key start
LH: loop header
LB: loop body
LE: loop exit
PB: predicated region body
PF: predicated region fallthrough
CT: control target
= control target key end

     0   :  { %vm28_vm0 = vcmask 261120   ;;  %vm213_vm1 = vcmask 130048   ;;  %vm548_vm2 = vcmask 392192   ;;  %vm632_vm3 = vcmask 60416   ;;  %s998_s28 = smov 8   ;;  %s999_s29 = smov 32   ;;  %s1204_s2 = inlined_call_operand.vmem [shape: f32[3,32,48], index: 2, kind: input, shape index: {}]   ;;  %s1205_s0 = inlined_call_operand.vmem [shape: f32[4,16,32], index: 0, kind: input, shape index: {}]   ;;  %s1206_s1 = inlined_call_operand.vmem [shape: f32[3,12,16], index: 1, kind: input, shape index: {}]   ;;  %s1207_s3 = inlined_call_operand.vmem [shape: f32[48,8], index: 3, kind: input, shape index: {}]   ;;  %s1208_s4 = inlined_call_operand.vmem [shape: f32[2,8], index: 4, kind: input, shape index: {}]   ;;  %s1209_s5 = inlined_call_operand.vmem [shape: f32[12,48], index: 5, kind: output, shape index: {}]  }
   0x1   :  { %v46_v0 = vld [vmem:[%s1204_s2 + $0x18] sm:$0xff]  ;;  %v45_v2 = vld [vmem:[%s1204_s2 + $0x10] sm:$0xff]  ;;  %v44_v4 = vld [vmem:[%s1204_s2 + $0x8] sm:$0xff]  ;;  %vm630_vm4 = vcmask 64512   ;;  %s1000_s30 = smov 16   ;;  %s1001_s6 = smov 40  }
   0x2   :  { %v837_v1 = vld [vmem:[%s1204_s2 + $0x38] sm:$0xff]  ;;  %906 = vmatprep.subr.mxu0 %v46_v0  ;;  %v836_v3 = vld [vmem:[%s1204_s2 + $0x30] sm:$0xff]  ;;  %v835_v5 = vld [vmem:[%s1204_s2 + $0x28] sm:$0xff]  ;;  %vm660_vm5 = vcmask 195584   ;;  %vm663_vm6 = vcmask 326656   ;;  %vm826_vm7 = vcmask 388096  }
   0x3   :  { %917 = vmatprep.subr.mxu1 %v837_v1  ;;  %907 = vmatpush3.msra.mxu0 %v46_v0  ;;  %v43_v6 = vld [vmem:[%s1204_s2] sm:$0xff]  ;;  %v22_v9 = vld [vmem:[%s1205_s0 + $0x10] sm:$0xff]  ;;  %v21_v16 = vld [vmem:[%s1205_s0 + $0x8] sm:$0xff] }
   0x4   :  { %918 = vmatpush3.msra.mxu1 %v837_v1  ;;  %v834_v7 = vld [vmem:[%s1204_s2 + $0x20] sm:$0xff]  ;;  %908 = vmatprep.subr.mxu0 %v45_v2  ;;  %v26_v11 = vld [vmem:[%s1205_s0 + $0x30] sm:$0xff]  ;;  %v30_v13 = vsel %vm28_vm0, %v22_v9, -inf  ;;  %v23_v17 = vld [vmem:[%s1205_s0 + $0x18] sm:$0xff]  ;;  %v36_v22 = vsel %vm28_vm0, %v21_v16, -inf }
   0x5   :  { %v20_v8 = vld [vmem:[%s1205_s0] sm:$0xff]  ;;  %919 = vmatprep.subr.mxu1 %v836_v3  ;;  %909 = vmatpush3.msra.mxu0 %v45_v2  ;;  %v33_v15 = vsel %vm28_vm0, %v26_v11, -inf  ;;  %v25_v18 = vld [vmem:[%s1205_s0 + $0x28] sm:$0xff]  ;;  %v27_v21 = vld [vmem:[%s1205_s0 + $0x38] sm:$0xff]  ;;  %v37_v23 = vsel %vm28_vm0, %v23_v17, -inf }
   0x6   :  { %v24_v10 = vld [vmem:[%s1205_s0 + $0x20] sm:$0xff]  ;;  %v29_v12 = vsel %vm28_vm0, %v20_v8, -inf  ;;  %920 = vmatpush3.msra.mxu1 %v836_v3  ;;  %910 = vmatprep.subr.mxu0 %v44_v4  ;;  %v34_v20 = vmax.f32 %v30_v13, %v33_v15  ;;  %v38_v24 = vsel %vm28_vm0, %v25_v18, -inf  ;;  %v40_v25 = vsel %vm28_vm0, %v27_v21, -inf  ;;  %v840_v30 = vld [vmem:[%s1206_s1 + $0x10] sm:$0xff]  ;;  %v849_v38 = vld [vmem:[%s1204_s2 + $0x58] sm:$0xff] }
   0x7   :  { %v31_v14 = vsel %vm28_vm0, %v24_v10, -inf  ;;  %921 = vmatprep.subr.mxu1 %v835_v5  ;;  %911 = vmatpush3.msra.mxu0 %v44_v4  ;;  %v39_v27 = vmax.f32 %v36_v22, %v38_v24  ;;  %v41_v28 = vmax.f32 %v37_v23, %v40_v25  ;;  %v128_v31 = vld [vmem:[%s1206_s1] sm:$0xff]  ;;  %v841_v36 = vld [vmem:[%s1206_s1 + $0x18] sm:$0xf]  ;;  %v129_v37 = vld [vmem:[%s1206_s1 + $0x8] sm:$0xf]  ;;  %v665_v10 = vlaneseq }
   0x8   :  { %v32_v19 = vmax.f32 %v29_v12, %v31_v14  ;;  %922 = vmatpush3.msra.mxu1 %v835_v5  ;;  %912 = vmatprep.subr.mxu0 %v43_v6  ;;  %v848_v39 = vld [vmem:[%s1204_s2 + $0x50] sm:$0xff]  ;;  %v847_v40 = vld [vmem:[%s1204_s2 + $0x48] sm:$0xff]  ;;  %v846_v41 = vld [vmem:[%s1204_s2 + $0x40] sm:$0xff] }
   0x9   :  { %923 = vmatprep.subr.mxu1 %v834_v7  ;;  %913 = vmatpush3.msra.mxu0 %v43_v6  ;;  %v42_v29 = vmax.f32 %v39_v27, %v41_v28  ;;  %v852_v42 = vld [vmem:[%s1206_s1 + $0x20] sm:$0xff]  ;;  %v547_v43 = vld [vmem:[%s1207_s3 + $0x28] sm:$0xff]  ;;  %v545_v45 = vld [vmem:[%s1207_s3 + $0x18] sm:$0xff]  ;;  %v666_v13 = vshrl.u32 %v665_v10, 7 }
   0xa   :  { %v35_v26 = vmax.f32 %v32_v19, %v34_v20  ;;  %924 = vmatpush3.msra.mxu1 %v834_v7  ;;  %v546_v44 = vld [vmem:[%s1207_s3 + $0x20] sm:$0xff]  ;;  %v853_v50 = vld [vmem:[%s1206_s1 + $0x28] sm:$0xf]  ;;  %v544_v51 = vld [vmem:[%s1207_s3 + $0x10] sm:$0xff] }
   0xb   :  { %v543_v52 = vld [vmem:[%s1207_s3 + $0x8] sm:$0xff]  ;;  %v542_v53 = vld [vmem:[%s1207_s3] sm:$0xff]  ;;  %s997_s3 = smov 24   ;;  %v1160_v19 = vsub.s32 0, %v666_v13 }
   0xc   :  { %914 = vmatprep.mubr.msk.f32.mxu0 %vm28_vm0, %v35_v26  ;;  %925 = vmatprep.mubr.msk.f32.mxu1 %vm28_vm0, %v35_v26  ;;  %v795_v28 = vld [vmem:[%s1208_s4 + $0x1] sm:$0x1] }
   0xd   :  { %915 = vmatmul.mubr.msk.f32.vlgmr.msra.gmra.mxu0 %vm28_vm0, %v42_v29  ;;  %926 = vmatmul.mubr.msk.f32.vlgmr.msra.gmra.mxu1 %vm28_vm0, %v42_v29 }
   0xe   :  { %932 = vmatprep.mubr.msk.f32.mxu0 %vm213_vm1, %v840_v30  ;;  %939 = vmatprep.mubr.msk.f32.mxu1 %vm213_vm1, %v128_v31 }
  0xcd   :  { %v916_v32 = vpop.f32.mrf.mxu0  ;;  %v927_v33 = vpop.f32.mrf.mxu1 }
  0xce   :  { %928 = vmatprep.subr.mxu0 %v927_v33  ;;  %935 = vmatprep.subr.mxu1 %v916_v32 }
  0xcf   :  { %v119_v34 = vpop.f32.mrf.mxu0  ;;  %v201_v35 = vpop.f32.mrf.mxu1  ;;  %929 = vmatpush3.msra.mxu0 %v927_v33  ;;  %936 = vmatpush3.msra.mxu1 %v916_v32 }
  0xd0   :  { %930 = vmatprep.subr.mxu0 %v201_v35  ;;  %937 = vmatprep.subr.mxu1 %v119_v34 }
  0xd1   :  { %931 = vmatpush3.msra.mxu0 %v201_v35  ;;  %938 = vmatpush3.msra.mxu1 %v119_v34 }
  0xd2   :  { %933 = vmatmul.mubr.msk.f32.vlgmr.msra.gmra.mxu0 %vm213_vm1, %v841_v36  ;;  %940 = vmatmul.mubr.msk.f32.vlgmr.msra.gmra.mxu1 %vm213_vm1, %v129_v37 }
  0xd3   :  { %942 = vmatprep.subr.mxu0 %v849_v38  ;;  %950 = vmatprep.mubr.msk.f32.mxu0 %vm28_vm0, %v35_v26 }
  0xd4   :  { %943 = vmatpush3.msra.mxu0 %v849_v38  ;;  %957 = vmatprep.mubr.msk.f32.mxu1 %vm213_vm1, %v852_v42  ;;  %v764_v42 = vld [vmem:[%s1208_s4] sm:$0x1] }
  0xd5   :  { %944 = vmatprep.subr.mxu0 %v848_v39 }
  0xd6   :  { %945 = vmatpush3.msra.mxu0 %v848_v39 }
  0xd7   :  { %946 = vmatprep.subr.mxu0 %v847_v40 }
  0xd8   :  { %947 = vmatpush3.msra.mxu0 %v847_v40 }
  0xd9   :  { %948 = vmatprep.subr.mxu0 %v846_v41 }
  0xda   :  { %949 = vmatpush3.msra.mxu0 %v846_v41 }
  0xdb   :  { %951 = vmatmul.mubr.msk.f32.vlgmr.msra.gmra.mxu0 %vm28_vm0, %v42_v29  ;;  %975 = vmatprep.subr.mxu0 %v547_v43 }
  0xdc   :  { %976 = vmatpush3.msra.mxu0 %v547_v43 }
  0xdd   :  { %977 = vmatprep.subr.mxu0 %v546_v44 }
  0xde   :  { %978 = vmatpush3.msra.mxu0 %v546_v44 }
  0xdf   :  { %979 = vmatprep.subr.mxu0 %v545_v45 }
  0xe0   :  { %980 = vmatpush3.msra.mxu0 %v545_v45 }
  0xe1   :  { %981 = vmatprep.subr.mxu0 %v544_v51 }
  0xe2   :  { %982 = vmatpush3.msra.mxu0 %v544_v51 }
  0xe3   :  { %983 = vmatprep.subr.mxu0 %v543_v52 }
  0xe4   :  { %984 = vmatpush3.msra.mxu0 %v543_v52 }
  0xe5   :  { %985 = vmatprep.subr.mxu0 %v542_v53 }
  0xe6   :  { %986 = vmatpush3.msra.mxu0 %v542_v53 }
 0x192   :  { %v934_v46 = vpop.f32.mrf.mxu0  ;;  %v941_v54 = vpop.f32.mrf.mxu1 }
 0x193   :  { %v373_v58 = vadd.f32 %v941_v54, %v934_v46 }
 0x194   :  { %v286_v47 = vpop.f32.mrf.mxu0  ;;  %v367_v55 = vpop.f32.mrf.mxu1 }
 0x195   :  { %v368_v57 = vadd.f32 %v367_v55, %v286_v47 }
 0x19b   :  { %v952_v48 = vpop.f32.mrf.mxu0 }
 0x19c   :  { %953 = vmatprep.subr.mxu1 %v952_v48 }
 0x19d   :  { %v447_v49 = vpop.f32.mrf.mxu0  ;;  %954 = vmatpush3.msra.mxu1 %v952_v48 }
 0x19e   :  { %955 = vmatprep.subr.mxu1 %v447_v49 }
 0x19f   :  { %956 = vmatpush3.msra.mxu1 %v447_v49 }
 0x1a0   :  { %958 = vmatmul.mubr.msk.f32.vlgmr.msra.gmra.mxu1 %vm213_vm1, %v853_v50  ;;  %960 = vmatprep.subr.mxu1 %v547_v43 }
 0x1a1   :  { %961 = vmatpush3.msra.mxu1 %v547_v43 }
 0x1a2   :  { %962 = vmatprep.subr.mxu1 %v546_v44 }
 0x1a3   :  { %963 = vmatpush3.msra.mxu1 %v546_v44 }
 0x1a4   :  { %964 = vmatprep.subr.mxu1 %v545_v45 }
 0x1a5   :  { %965 = vmatpush3.msra.mxu1 %v545_v45 }
 0x1a6   :  { %966 = vmatprep.subr.mxu1 %v544_v51 }
 0x1a7   :  { %967 = vmatpush3.msra.mxu1 %v544_v51 }
 0x1a8   :  { %968 = vmatprep.subr.mxu1 %v543_v52 }
 0x1a9   :  { %969 = vmatpush3.msra.mxu1 %v543_v52 }
 0x1aa   :  { %970 = vmatprep.subr.mxu1 %v542_v53 }
 0x1ab   :  { %971 = vmatpush3.msra.mxu1 %v542_v53 }
 0x260   :  { %v959_v56 = vpop.f32.mrf.mxu1 }
 0x261   :  { %v541_v61 = vadd.f32 %v959_v56, %v373_v58 }
 0x262   :  { %v531_v59 = vpop.f32.mrf.mxu1 }
 0x263   :  { %v540_v60 = vadd.f32 %v531_v59, %v368_v57 }
 0x265   :  { %972 = vmatprep.mubr.msk.f32.mxu1 %vm548_vm2, %v540_v60 }
 0x266   :  { %973 = vmatmul.mubr.msk.f32.vlgmr.msra.gmra.mxu1 %vm548_vm2, %v541_v61 }
 0x326   :  { %v974_v62 = vpop.f32.mrf.mxu1 }
 0x327   :  { %v633_v0 = vsel %vm632_vm3, %v974_v62, 0.0 }
 0x328   :  { %v621_v63 = vpop.f32.mrf.mxu1 }
 0x329   :  { %v631_v1 = vsel %vm630_vm4, %v621_v63, 0.0 }
 0x32a   :  { %v634_v2 = vadd.f32 %v633_v0, %v631_v1 }
 0x32c   :  { %v635_v3 = vrot.slane %v634_v2, 4 }
 0x32e   :  { %v636_v4 = vadd.f32 %v635_v3, %v634_v2 }
 0x330   :  { %v637_v5 = vrot.slane %v636_v4, 2 }
 0x332   :  { %v638_v6 = vadd.f32 %v637_v5, %v636_v4 }
 0x334   :  { %v639_v7 = vrot.slane %v638_v6, 1 }
 0x336   :  { %v640_v8 = vadd.f32 %v639_v7, %v638_v6 }
 0x338   :  { %v641_v9 = vmul.f32 0.013888889, %v640_v8 }
 0x33a   :  { %649 = vrot.lane.b32.xlu1 %v641_v9, %s997_s3  ;;  %643 = vrot.lane.b32.xlu0 %v641_v9, %s998_s28 }
 0x33e   :  { %652 = vrot.lane.b32.xlu1 %v641_v9, %s999_s29  ;;  %646 = vrot.lane.b32.xlu0 %v641_v9, %s1000_s30 }
 0x342   :  { %655 = vrot.lane.b32.xlu0 %v641_v9, %s1001_s6 }
 0x346   :  { %797 = vrot.lane.b32.xlu0 %v795_v28, %s998_s28 }
 0x34a   :  { %800 = vrot.lane.b32.xlu0 %v795_v28, %s1000_s30 }
 0x3ac   :  { %v650_v11 = vpop.permute.xlu1 %649  ;;  %v644_v12 = vpop.permute.xlu0 %643 }
 0x3ad   :  { %v658_v14 = vsel %vm630_vm4, %v641_v9, %v644_v12 }
 0x3b0   :  { %v647_v15 = vpop.permute.xlu0 %646  ;;  %v653_v17 = vpop.permute.xlu1 %652 }
 0x3b1   :  { %v659_v16 = vsel %vm213_vm1, %v658_v14, %v647_v15 }
 0x3b2   :  { %v661_v18 = vsel %vm660_vm5, %v659_v16, %v650_v11 }
 0x3b3   :  { %v662_v20 = vsel %vm28_vm0, %v661_v18, %v653_v17 }
 0x3b4   :  { %v656_v21 = vpop.permute.xlu0 %655 }
 0x3b5   :  { %v664_v22 = vsel %vm663_vm6, %v662_v20, %v656_v21 }
 0x3b6   :  { %v668_v23 = vrot.slane %v664_v22, %v1160_v19 }
 0x3b8   :  { %v669_v24 = vsub.f32 %v540_v60, %v668_v23  ;;  %v670_v25 = vsub.f32 %v541_v61, %v668_v23  ;;  %v798_v45 = vpop.permute.xlu0 %797 }
 0x3b9   :  { %v812_v52 = vsel %vm630_vm4, %v795_v28, %v798_v45 }
 0x3ba   :  { %v671_v26 = vmul.f32 %v669_v24, %v669_v24  ;;  %v672_v27 = vmul.f32 %v670_v25, %v670_v25 }
 0x3bc   :  { %987 = vmatprep.mubr.msk.f32.mxu0 %vm548_vm2, %v671_v26  ;;  %v801_v46 = vpop.permute.xlu0 %800 }
 0x3bd   :  { %988 = vmatmul.mubr.msk.f32.vlgmr.msra.gmra.mxu0 %vm548_vm2, %v672_v27  ;;  %v813_v58 = vsel %vm213_vm1, %v812_v52, %v801_v46 }
 0x47d   :  { %v989_v29 = vpop.f32.mrf.mxu0 }
 0x47e   :  { %v755_v31 = vsel %vm632_vm3, %v989_v29, 0.0 }
 0x47f   :  { %v745_v30 = vpop.f32.mrf.mxu0 }
 0x480   :  { %v754_v32 = vsel %vm630_vm4, %v745_v30, 0.0 }
 0x481   :  { %v756_v33 = vadd.f32 %v755_v31, %v754_v32 }
 0x483   :  { %v757_v34 = vrot.slane %v756_v33, 4 }
 0x485   :  { %v758_v35 = vadd.f32 %v757_v34, %v756_v33 }
 0x487   :  { %v759_v36 = vrot.slane %v758_v35, 2 }
 0x489   :  { %v760_v37 = vadd.f32 %v759_v36, %v758_v35 }
 0x48b   :  { %v761_v38 = vrot.slane %v760_v37, 1 }
 0x48d   :  { %v762_v39 = vadd.f32 %v761_v38, %v760_v37 }
 0x48f   :  { %v763_v40 = vmul.f32 0.013888889, %v762_v39 }
 0x491   :  { %v765_v41 = vadd.f32 1e-05, %v763_v40 }
 0x493   :  { %995 = vrsqrt.f32 %v765_v41 }
 0x4a0   :  { %v996_v43 = vpop.eup %995 }
 0x4a1   :  { %v767_v44 = vmul.f32 %v996_v43, %v764_v42 }
 0x4a3   :  { %772 = vrot.lane.b32.xlu0 %v767_v44, %s1000_s30  ;;  %769 = vrot.lane.b32.xlu1 %v767_v44, %s998_s28 }
 0x4a7   :  { %803 = vrot.lane.b32.xlu0 %v795_v28, %s997_s3  ;;  %775 = vrot.lane.b32.xlu1 %v767_v44, %s997_s3 }
 0x4ab   :  { %778 = vrot.lane.b32.xlu1 %v767_v44, %s999_s29  ;;  %809 = vrot.lane.b32.xlu0 %v795_v28, %s1001_s6 }
 0x4af   :  { %781 = vrot.lane.b32.xlu1 %v767_v44, %s1001_s6 }
 0x4b3   :  { %806 = vrot.lane.b32.xlu1 %v795_v28, %s999_s29 }
 0x515   :  { %v770_v47 = vpop.permute.xlu1 %769  ;;  %v773_v49 = vpop.permute.xlu0 %772 }
 0x516   :  { %v784_v50 = vsel %vm630_vm4, %v767_v44, %v770_v47 }
 0x517   :  { %v785_v53 = vsel %vm213_vm1, %v784_v50, %v773_v49 }
 0x519   :  { %v776_v48 = vpop.permute.xlu1 %775  ;;  %v804_v55 = vpop.permute.xlu0 %803 }
 0x51a   :  { %v786_v54 = vsel %vm660_vm5, %v785_v53, %v776_v48  ;;  %v814_v62 = vsel %vm660_vm5, %v813_v58, %v804_v55 }
 0x51d   :  { %v779_v51 = vpop.permute.xlu1 %778  ;;  %v810_v61 = vpop.permute.xlu0 %809 }
 0x51e   :  { %v787_v56 = vsel %vm28_vm0, %v786_v54, %v779_v51 }
 0x521   :  { %v782_v57 = vpop.permute.xlu1 %781 }
 0x522   :  { %v788_v59 = vsel %vm663_vm6, %v787_v56, %v782_v57 }
 0x523   :  { %v792_v60 = vrot.slane %v788_v59, %v1160_v19 }
 0x525   :  { %v807_v63 = vpop.permute.xlu1 %806  ;;  %v793_v2 = vmul.f32 %v792_v60, %v669_v24  ;;  %v794_v3 = vmul.f32 %v792_v60, %v670_v25 }
 0x526   :  { %v815_v0 = vsel %vm28_vm0, %v814_v62, %v807_v63 }
 0x527   :  { %v816_v1 = vsel %vm663_vm6, %v815_v0, %v810_v61 }
 0x528   :  { %v820_v4 = vrot.slane %v816_v1, %v1160_v19 }
 0x52a   :  { %v821_v5 = vadd.f32 %v820_v4, %v793_v2  ;;  %v822_v6 = vadd.f32 %v820_v4, %v794_v3 }
 0x52c   :  { %v823_v7 = vmax.f32 %v821_v5, 0.0  ;;  %v824_v8 = vmax.f32 %v822_v6, 0.0 }
 0x52e   :  { %825 = vst.msk [vmem:[%s1209_s5] sm:$0xff] %vm548_vm2, %v823_v7 }
 0x52f   :  { %827 = vst.msk [vmem:[%s1209_s5 + $0x8] sm:$0xf] %vm826_vm7, %v824_v8 }

</bundles_post_ra>
